<compile_context>
chip_gen: v6e
topology: v6e:2x2x1
jax: 0.10.0
libtpu: 0.0.40
codegen_flags: <defaults>
</compile_context>

<pallas_src>
import functools

import jax
import jax.numpy as jnp
from jax.experimental import pallas as pl
from jax.experimental.pallas import tpu as pltpu

_NEG_INF = -1e30  # finite sentinel: exp(_NEG_INF - m) flushes to 0.0, no NaNs


def _row_lse_kernel(lhs_ref, rhs_ref, o_ref, m_scr, l_scr, *,
                    n_valid, n_pad, tile):
    """Online logsumexp over non-diagonal similarity columns, per row block."""
    i = pl.program_id(0)       # row block (parallel)
    kj = pl.program_id(1)      # streamed column block (reduction axis, last)

    @pl.when(kj == 0)
    def _init():
        m_scr[...] = jnp.full(m_scr.shape, _NEG_INF, jnp.float32)
        l_scr[...] = jnp.zeros(l_scr.shape, jnp.float32)

    # (T, D) x (T, D) contracted on the last (lane) dim of both operands:
    # bf16 MXU matmul with f32 accumulation, no explicit transpose.
    # lhs already carries the 1/temperature_f scale.
    s = jax.lax.dot_general(
        lhs_ref[...], rhs_ref[...],
        dimension_numbers=(((1,), (1,)), ((), ())),
        preferred_element_type=jnp.float32)          # (T, T)

    # Tile-local masking: exclude the diagonal (j == r) and padded columns.
    row_ids = i * tile + jax.lax.broadcasted_iota(jnp.int32, (tile, tile), 0)
    col_ids = kj * tile + jax.lax.broadcasted_iota(jnp.int32, (tile, tile), 1)
    mask = row_ids == col_ids
    if n_pad > n_valid:                              # trace-time branch
        mask = mask | (col_ids >= n_valid)
    s = jnp.where(mask, _NEG_INF, s)

    # Online logsumexp update (f32 accumulation throughout).
    m_prev = m_scr[...]
    m_new = jnp.maximum(m_prev, jnp.max(s, axis=-1, keepdims=True))
    alpha = jnp.exp(m_prev - m_new)
    p = jnp.exp(s - m_new)
    l_scr[...] = alpha * l_scr[...] + jnp.sum(p, axis=-1, keepdims=True)
    m_scr[...] = m_new

    @pl.when(kj == pl.num_programs(1) - 1)
    def _finalize():
        o_ref[...] = m_scr[...] + jnp.log(l_scr[...])


def view_contrastive_loss(h_i, h_j, temperature_f, temperature_l=1.0,
                          tile=None):
    """Pallas implementation of ViewContrastiveLoss.forward."""
    del temperature_l  # TODO(synk): temperature_l is unused by the reference forward()
    B, D = h_i.shape
    N = 2 * B
    inv_t = jnp.float32(1.0 / temperature_f)

    h_i32 = h_i.astype(jnp.float32)
    h_j32 = h_j.astype(jnp.float32)

    # Positive logits: sim[r, (r+B)%N] = h_i[b].h_j[b]/T, each pair appears
    # twice over the N rows.  O(B*D) elementwise + reduce -> plain JAX, f32.
    pos_sum = 2.0 * inv_t * jnp.sum(h_i32 * h_j32)

    # bf16 matmul operands (half the HBM traffic / VMEM footprint);
    # fold 1/temperature_f into the LHS copy once (no per-tile rescale).
    lhs = jnp.concatenate([(h_i32 * inv_t).astype(jnp.bfloat16),
                           (h_j32 * inv_t).astype(jnp.bfloat16)], axis=0)
    rhs = jnp.concatenate([h_i32.astype(jnp.bfloat16),
                           h_j32.astype(jnp.bfloat16)], axis=0)

    # Tile choice: 256 (v6e/v7x 256x256 MXU aligned) for large N, else 128
    # (v5e MXU shape / minimal lane width).  Pad N up to a tile multiple.
    if tile is None:
        tile = 256 if N >= 512 else 128
    n_pad = pl.cdiv(N, tile) * tile
    if n_pad != N:
        lhs = jnp.pad(lhs, ((0, n_pad - N), (0, 0)))
        rhs = jnp.pad(rhs, ((0, n_pad - N), (0, 0)))

    n_blk = n_pad // tile
    kernel = functools.partial(_row_lse_kernel, n_valid=N, n_pad=n_pad,
                               tile=tile)

    lse = pl.pallas_call(
        kernel,
        out_shape=jax.ShapeDtypeStruct((n_pad, 1), jnp.float32),
        grid_spec=pltpu.PrefetchScalarGridSpec(
            num_scalar_prefetch=0,
            grid=(n_blk, n_blk),
            in_specs=[
                # LHS row panel: resident across the whole column sweep.
                pl.BlockSpec((tile, D), lambda i, j: (i, 0)),
                # RHS column panel: streamed along the reduction axis.
                pl.BlockSpec((tile, D), lambda i, j: (j, 0)),
            ],
            # Per-row logsumexp; written once per row block (last column step).
            out_specs=pl.BlockSpec((tile, 1), lambda i, j: (i, 0)),
            scratch_shapes=[
                pltpu.VMEM((tile, 1), jnp.float32),   # running max m
                pltpu.VMEM((tile, 1), jnp.float32),   # running sum l
            ],
        ),
        compiler_params=pltpu.CompilerParams(
            dimension_semantics=("parallel", "arbitrary"),
            vmem_limit_bytes=32 * 1024 * 1024,
        ),
        cost_estimate=pl.CostEstimate(
            flops=2 * n_pad * n_pad * D,
            transcendentals=n_pad * n_pad,
            bytes_accessed=2 * n_pad * D * (1 + n_blk) + 4 * n_pad,
        ),
    )(lhs, rhs)

    loss = (jnp.sum(lse[:N, 0]) - pos_sum) / jnp.float32(N)
    return loss


def _reference_loss(h_i, h_j, temperature_f):
    """Pure-JAX f32 reference mirroring the PyTorch forward() exactly."""
    B = h_i.shape[0]
    N = 2 * B
    h = jnp.concatenate([h_i, h_j], axis=0).astype(jnp.float32)
    sim = (h @ h.T) / temperature_f
    pos = jnp.concatenate([jnp.diagonal(sim, offset=B),
                           jnp.diagonal(sim, offset=-B)], axis=0)
    row = jnp.arange(N)[:, None]
    col = jnp.arange(N)[None, :]
    full = jnp.where(row != col, sim, -jnp.inf)      # positive + negatives
    lse = jax.scipy.special.logsumexp(full, axis=1)
    return jnp.sum(lse - pos) / N


if __name__ == "__main__":
    batch_size = 128          # N = 256 -> grid (2, 2) with 128x128 tiles
    hidden = 32
    temperature_f = 0.5
    temperature_l = 1.0       # unused by the reference forward()

    key = jax.random.PRNGKey(0)
    k_i, k_j = jax.random.split(key)
    h_i = jax.random.normal(k_i, (batch_size, hidden), dtype=jnp.float32)
    h_j = jax.random.normal(k_j, (batch_size, hidden), dtype=jnp.float32)

    loss = view_contrastive_loss(h_i, h_j, temperature_f, temperature_l)
    loss = jax.block_until_ready(loss)

    ref = _reference_loss(h_i, h_j, temperature_f)
    assert jnp.isfinite(loss), loss
    # bf16 matmul operands vs the pure-f32 reference -> loose tolerance.
    assert jnp.allclose(loss, ref, rtol=2e-2, atol=2e-1), (loss, ref)

    print("KERNEL_OK")
</pallas_src>

<mosaic_0001>
module attributes {stable_mosaic.version = 11 : i64} {
  func.func @_row_lse_kernel(%arg0: i32, %arg1: i32, %arg2: memref<128x32xbf16, #tpu.memory_space<vmem>>, %arg3: memref<128x32xbf16, #tpu.memory_space<vmem>>, %arg4: memref<128x1xf32, #tpu.memory_space<vmem>>, %arg5: memref<128x1xf32, #tpu.memory_space<vmem>>, %arg6: memref<128x1xf32, #tpu.memory_space<vmem>>) attributes {dimension_semantics = [#tpu.dimension_semantics<parallel>, #tpu.dimension_semantics<arbitrary>], iteration_bounds = array<i64: 2, 2>, scalar_prefetch = 0 : i64, scratch_operands = 2 : i64, tpu.core_type = #tpu.core_type<tc>, window_params = [{transform_indices = @transform_0, window_bounds = array<i64: 128, 32>}, {transform_indices = @transform_1, window_bounds = array<i64: 128, 32>}, {transform_indices = @transform_2, window_bounds = array<i64: 128, 1>}]} {
    %c0_i32 = arith.constant 0 : i32
    %0 = arith.cmpi eq, %arg1, %c0_i32 : i32
    %1 = arith.extui %0 : i1 to i32
    %c0_i32_0 = arith.constant 0 : i32
    %2 = arith.cmpi ne, %1, %c0_i32_0 : i32
    scf.if %2 {
      %cst_17 = arith.constant -1.000000e+30 : f32
      %36 = vector.broadcast %cst_17 : f32 to vector<128x1xf32>
      %c0_18 = arith.constant 0 : index
      %c0_19 = arith.constant 0 : index
      %37 = vector.load %arg5[%c0_18, %c0_19] : memref<128x1xf32, #tpu.memory_space<vmem>>, vector<128x1xf32>
      tpu.vector_store %arg5[%c0_18, %c0_19], %36 {strides = array<i32>} : memref<128x1xf32, #tpu.memory_space<vmem>>, vector<128x1xf32>,
      %cst_20 = arith.constant 0.000000e+00 : f32
      %38 = vector.broadcast %cst_20 : f32 to vector<128x1xf32>
      %c0_21 = arith.constant 0 : index
      %c0_22 = arith.constant 0 : index
      %39 = vector.load %arg6[%c0_21, %c0_22] : memref<128x1xf32, #tpu.memory_space<vmem>>, vector<128x1xf32>
      tpu.vector_store %arg6[%c0_21, %c0_22], %38 {strides = array<i32>} : memref<128x1xf32, #tpu.memory_space<vmem>>, vector<128x1xf32>,
    } else {
    }
    %c0 = arith.constant 0 : index
    %c0_1 = arith.constant 0 : index
    %3 = vector.load %arg2[%c0, %c0_1] : memref<128x32xbf16, #tpu.memory_space<vmem>>, vector<128x32xbf16>
    %c0_2 = arith.constant 0 : index
    %c0_3 = arith.constant 0 : index
    %4 = vector.load %arg3[%c0_2, %c0_3] : memref<128x32xbf16, #tpu.memory_space<vmem>>, vector<128x32xbf16>
    %cst = arith.constant dense<0.000000e+00> : vector<128x128xf32>
    %5 = tpu.matmul %3, %4, %cst {dimension_numbers = #tpu.dot_dimension_numbers<[1], [1], [0], [0], [0, 0, 1, 0], [], []>} : vector<128x32xbf16>, vector<128x32xbf16>, vector<128x128xf32> -> vector<128x128xf32>
    %c128_i32 = arith.constant 128 : i32
    %6 = arith.muli %arg0, %c128_i32 : i32
    %7 = tpu.iota {dimensions = array<i32: 0>} : vector<128x128xi32>
    %8 = vector.broadcast %6 : i32 to vector<128x128xi32>
    %9 = arith.addi %8, %7 : vector<128x128xi32>
    %c128_i32_4 = arith.constant 128 : i32
    %10 = arith.muli %arg1, %c128_i32_4 : i32
    %11 = tpu.iota {dimensions = array<i32: 1>} : vector<128x128xi32>
    %12 = vector.broadcast %10 : i32 to vector<128x128xi32>
    %13 = arith.addi %12, %11 : vector<128x128xi32>
    %14 = arith.cmpi eq, %9, %13 : vector<128x128xi32>
    %cst_5 = arith.constant -1.000000e+30 : f32
    %15 = vector.broadcast %cst_5 : f32 to vector<128x128xf32>
    %16 = arith.select %14, %15, %5 : vector<128x128xi1>, vector<128x128xf32>
    %c0_6 = arith.constant 0 : index
    %c0_7 = arith.constant 0 : index
    %17 = vector.load %arg5[%c0_6, %c0_7] : memref<128x1xf32, #tpu.memory_space<vmem>>, vector<128x1xf32>
    %cst_8 = arith.constant dense<0xFF800000> : vector<128xf32>
    %18 = vector.multi_reduction <maximumf>, %16, %cst_8 [1] : vector<128x128xf32> to vector<128xf32>
    %19 = vector.shape_cast %18 : vector<128xf32> to vector<128x1xf32>
    %20 = arith.maximumf %17, %19 : vector<128x1xf32>
    %21 = arith.subf %17, %20 : vector<128x1xf32>
    %22 = math.exp %21 : vector<128x1xf32>
    %23 = vector.broadcast %20 : vector<128x1xf32> to vector<128x128xf32>
    %24 = arith.subf %16, %23 : vector<128x128xf32>
    %25 = math.exp %24 : vector<128x128xf32>
    %c0_9 = arith.constant 0 : index
    %c0_10 = arith.constant 0 : index
    %26 = vector.load %arg6[%c0_9, %c0_10] : memref<128x1xf32, #tpu.memory_space<vmem>>, vector<128x1xf32>
    %27 = arith.mulf %22, %26 : vector<128x1xf32>
    %cst_11 = arith.constant dense<0.000000e+00> : vector<128xf32>
    %28 = vector.multi_reduction <add>, %25, %cst_11 [1] : vector<128x128xf32> to vector<128xf32>
    %29 = vector.shape_cast %28 : vector<128xf32> to vector<128x1xf32>
    %30 = arith.addf %27, %29 : vector<128x1xf32>
    %c0_12 = arith.constant 0 : index
    %c0_13 = arith.constant 0 : index
    %31 = vector.load %arg6[%c0_12, %c0_13] : memref<128x1xf32, #tpu.memory_space<vmem>>, vector<128x1xf32>
    tpu.vector_store %arg6[%c0_12, %c0_13], %30 {strides = array<i32>} : memref<128x1xf32, #tpu.memory_space<vmem>>, vector<128x1xf32>,
    %c0_14 = arith.constant 0 : index
    %c0_15 = arith.constant 0 : index
    %32 = vector.load %arg5[%c0_14, %c0_15] : memref<128x1xf32, #tpu.memory_space<vmem>>, vector<128x1xf32>
    tpu.vector_store %arg5[%c0_14, %c0_15], %20 {strides = array<i32>} : memref<128x1xf32, #tpu.memory_space<vmem>>, vector<128x1xf32>,
    %c1_i32 = arith.constant 1 : i32
    %33 = arith.cmpi eq, %arg1, %c1_i32 : i32
    %34 = arith.extui %33 : i1 to i32
    %c0_i32_16 = arith.constant 0 : i32
    %35 = arith.cmpi ne, %34, %c0_i32_16 : i32
    scf.if %35 {
      %c0_17 = arith.constant 0 : index
      %c0_18 = arith.constant 0 : index
      %36 = vector.load %arg5[%c0_17, %c0_18] : memref<128x1xf32, #tpu.memory_space<vmem>>, vector<128x1xf32>
      %c0_19 = arith.constant 0 : index
      %c0_20 = arith.constant 0 : index
      %37 = vector.load %arg6[%c0_19, %c0_20] : memref<128x1xf32, #tpu.memory_space<vmem>>, vector<128x1xf32>
      %38 = math.log %37 : vector<128x1xf32>
      %39 = arith.addf %36, %38 : vector<128x1xf32>
      %c0_21 = arith.constant 0 : index
      %c0_22 = arith.constant 0 : index
      %40 = vector.load %arg4[%c0_21, %c0_22] : memref<128x1xf32, #tpu.memory_space<vmem>>, vector<128x1xf32>
      tpu.vector_store %arg4[%c0_21, %c0_22], %39 {strides = array<i32>} : memref<128x1xf32, #tpu.memory_space<vmem>>, vector<128x1xf32>,
    } else {
    }
    return
  }
  func.func @transform_0(%arg0: i32, %arg1: i32) -> (i32, i32) {
    %c0_i32 = arith.constant 0 : i32
    %c0_i32_0 = arith.constant 0 : i32
    return %arg0, %c0_i32 : i32, i32
  }
  func.func @transform_1(%arg0: i32, %arg1: i32) -> (i32, i32) {
    %c0_i32 = arith.constant 0 : i32
    %c0_i32_0 = arith.constant 0 : i32
    return %arg1, %c0_i32 : i32, i32
  }
  func.func @transform_2(%arg0: i32, %arg1: i32) -> (i32, i32) {
    %c0_i32 = arith.constant 0 : i32
    %c0_i32_0 = arith.constant 0 : i32
    return %arg0, %c0_i32 : i32, i32
  }
}

</mosaic_0001>

<bundles_post_ra>
// kernel: tpu_custom_call.1
= control target key start
LH: loop header
LB: loop body
LE: loop exit
PB: predicated region body
PF: predicated region fallthrough
CT: control target
= control target key end

     0   :  { %s1418_s9 = smov 0   ;;  %s1420_s10 = smov 0   ;;  %s1942_s0 = inlined_call_operand.vmem [shape: bf16[256,32], index: 0, kind: input, shape index: {}]   ;;  %s1943_s1 = inlined_call_operand.vmem [shape: bf16[256,32], index: 1, kind: input, shape index: {}]   ;;  %s1944_s2 = inlined_call_operand.vmem [shape: f32[256,1], index: 2, kind: output, shape index: {}]  }
   0x1   :  { %s1422_s11 = smov 0   ;;  %s1424_s12 = smov 0  }
   0x2   :  { %s1426_s13 = smov 0  }
   0x3 LB: > { %s21_s14 = sadd.s32 1, %s1390_s11  ;;  %s24_s15 = sadd.s32 1, %s1394_s12  ;;  %s1398_s13 = sphi %s1426_s13, %s12_s13   ;;  %s1394_s12 = sphi %s1424_s12, %s1962_s12   ;;  %s1390_s11 = sphi %s1422_s11, %s1961_s11   ;;  %s1386_s10 = sphi %s1420_s10, %s1960_s10   ;;  %s1382_s9 = sphi %s1418_s9, %s1959_s9  }
   0x4   : > { %p22_p0 = scmp.ge.s32.totalorder %s21_s14, 2  ;;  %p1086_p1 = scmp.ge.s32.totalorder %s1398_s13, 1 }
   0x5   : > { %p136_p2 = scmp.lt.s32.totalorder %s1398_s13, 5 }
   0x6   : > { %s1964_s14 = smov (%p22_p0, %s21_s14), 0  ;;  %s1966_s15 = smov (!%p22_p0, %s24_s15), %s1394_s12 }
   0x7   : > { %p137_p3 = pnand %p1086_p1, %p136_p2  ;;  %p26_p4 = scmp.ge.s32.totalorder %s1966_s15, 2 }
   0x8   : > { %s1087_s16 = sshll.u32 (!%p137_p3), %s1386_s10, 4  ;;  %s1089_s17 = sshll.u32 (!%p137_p3), %s1382_s9, 4 }
   0x9   : > { %s1968_s15 = smov (%p26_p4, %s1966_s15), 0  ;;  %140 = sbr.rel (%p137_p3) target bundleno = 802 (0x322), region = 28 }
   0xa   : > { %p164_p5 = scmp.lt.s32.totalorder (!%p137_p3), %s1087_s16, 31  ;;  %p170_p6 = scmp.lt.s32.totalorder (!%p137_p3), %s1089_s17, 31 }
   0xb   : > { %p1093_p7 = scmp.ne.s32.totalorder (!%p137_p3), %s1382_s9, 0 }
   0xe   : > { %s1970_s16 = smov (!%p164_p5, %s1087_s16), 31  ;;  %s1972_s17 = smov (!%p170_p6, %s1089_s17), 31 }
   0xf   : > { %s1088_s18 = sshll.u32 %s1970_s16, 2  ;;  %s1092_s19 = sshll.u32 %s1970_s16, 3 }
  0x10   : > { %s1457_s22 = scalar_lea.vmem %s1942_s0, %s1088_s18  ;;  %s1090_s23 = sshll.u32 %s1972_s17, 2 }
  0x11   : > { %s1462_s26 = scalar_lea.vmem %s1943_s1, %s1090_s23  ;;  %s1467_s29 = scalar_lea.vmem %s1944_s2, %s1092_s19 }
  0x12   : > { %185 = sbr.rel (%p1093_p7) target bundleno = 40 (0x28), region = 32 }
  0x17   : > { %vm186_vm0 = vcmask 7168   ;;  %v1400_v0 = vmov -1e+30   ;;  %v1401_v1 = vmov 0.0  }
  0x18   : > { %187 = vst.msk [vmem:[#allocation2] sm:$0xff] %vm186_vm0, %v1400_v0  ;;  %188 = vst.msk [vmem:[#allocation2 + $0x8] sm:$0xff] %vm186_vm0, %v1400_v0 }
  0x19   : > { %189 = vst.msk [vmem:[#allocation2 + $0x10] sm:$0xff] %vm186_vm0, %v1400_v0  ;;  %190 = vst.msk [vmem:[#allocation2 + $0x18] sm:$0xff] %vm186_vm0, %v1400_v0 }
  0x1a   : > { %191 = vst.msk [vmem:[#allocation2 + $0x20] sm:$0xff] %vm186_vm0, %v1400_v0  ;;  %192 = vst.msk [vmem:[#allocation2 + $0x28] sm:$0xff] %vm186_vm0, %v1400_v0 }
  0x1b   : > { %193 = vst.msk [vmem:[#allocation2 + $0x30] sm:$0xff] %vm186_vm0, %v1400_v0  ;;  %194 = vst.msk [vmem:[#allocation2 + $0x38] sm:$0xff] %vm186_vm0, %v1400_v0 }
  0x1c   : > { %195 = vst.msk [vmem:[#allocation2 + $0x40] sm:$0xff] %vm186_vm0, %v1400_v0  ;;  %196 = vst.msk [vmem:[#allocation2 + $0x48] sm:$0xff] %vm186_vm0, %v1400_v0 }
  0x1d   : > { %197 = vst.msk [vmem:[#allocation2 + $0x50] sm:$0xff] %vm186_vm0, %v1400_v0  ;;  %198 = vst.msk [vmem:[#allocation2 + $0x58] sm:$0xff] %vm186_vm0, %v1400_v0 }
  0x1e   : > { %199 = vst.msk [vmem:[#allocation2 + $0x60] sm:$0xff] %vm186_vm0, %v1400_v0  ;;  %200 = vst.msk [vmem:[#allocation2 + $0x68] sm:$0xff] %vm186_vm0, %v1400_v0 }
  0x1f   : > { %201 = vst.msk [vmem:[#allocation2 + $0x70] sm:$0xff] %vm186_vm0, %v1400_v0  ;;  %202 = vst.msk [vmem:[#allocation2 + $0x78] sm:$0xff] %vm186_vm0, %v1400_v0 }
  0x20   : > { %203 = vst.msk [vmem:[#allocation3] sm:$0xff] %vm186_vm0, %v1401_v1  ;;  %204 = vst.msk [vmem:[#allocation3 + $0x8] sm:$0xff] %vm186_vm0, %v1401_v1 }
  0x21   : > { %205 = vst.msk [vmem:[#allocation3 + $0x10] sm:$0xff] %vm186_vm0, %v1401_v1  ;;  %206 = vst.msk [vmem:[#allocation3 + $0x18] sm:$0xff] %vm186_vm0, %v1401_v1 }
  0x22   : > { %207 = vst.msk [vmem:[#allocation3 + $0x20] sm:$0xff] %vm186_vm0, %v1401_v1  ;;  %208 = vst.msk [vmem:[#allocation3 + $0x28] sm:$0xff] %vm186_vm0, %v1401_v1 }
  0x23   : > { %209 = vst.msk [vmem:[#allocation3 + $0x30] sm:$0xff] %vm186_vm0, %v1401_v1  ;;  %210 = vst.msk [vmem:[#allocation3 + $0x38] sm:$0xff] %vm186_vm0, %v1401_v1 }
  0x24   : > { %211 = vst.msk [vmem:[#allocation3 + $0x40] sm:$0xff] %vm186_vm0, %v1401_v1  ;;  %212 = vst.msk [vmem:[#allocation3 + $0x48] sm:$0xff] %vm186_vm0, %v1401_v1 }
  0x25   : > { %213 = vst.msk [vmem:[#allocation3 + $0x50] sm:$0xff] %vm186_vm0, %v1401_v1  ;;  %214 = vst.msk [vmem:[#allocation3 + $0x58] sm:$0xff] %vm186_vm0, %v1401_v1 }
  0x26   : > { %215 = vst.msk [vmem:[#allocation3 + $0x60] sm:$0xff] %vm186_vm0, %v1401_v1  ;;  %216 = vst.msk [vmem:[#allocation3 + $0x68] sm:$0xff] %vm186_vm0, %v1401_v1 }
  0x27   : > { %217 = vst.msk [vmem:[#allocation3 + $0x70] sm:$0xff] %vm186_vm0, %v1401_v1  ;;  %218 = vst.msk [vmem:[#allocation3 + $0x78] sm:$0xff] %vm186_vm0, %v1401_v1 }
  0x28 PF: > { %v1248_v2 = vld [vmem:[%s1462_s26 + $0x38] sm:$0xff]   ;;  %vm331_vm1 = vcmask 261120   ;;  %v1249_v3 = vld [vmem:[%s1462_s26 + $0x30] sm:$0xff]   ;;  %v1250_v5 = vld [vmem:[%s1462_s26 + $0x28] sm:$0xff]   ;;  %v478_v26 = vlaneseq  ;;  %s1118_s30 = sshll.u32 %s1386_s10, 7  ;;  %s1119_s3 = sshll.u32 %s1382_s9, 7 }
  0x29   : > { %1187 = vmatprep.subr.msk.bf16.mxu0 %vm331_vm1, %v1248_v2  ;;  %1188 = vmatprep.subr.msk.bf16.mxu1 %vm331_vm1, %v1248_v2  ;;  %v378_v4 = vsel %vm331_vm1, %v1248_v2, 0  ;;  %v375_v6 = vsel %vm331_vm1, %v1249_v3, 0  ;;  %v1256_v7 = vld [vmem:[%s1457_s22] sm:$0xff]   ;;  %v372_v9 = vsel %vm331_vm1, %v1250_v5, 0  ;;  %v1252_v12 = vld [vmem:[%s1462_s26 + $0x18] sm:$0xff]   ;;  %v1253_v14 = vld [vmem:[%s1462_s26 + $0x10] sm:$0xff]   ;;  %v1556_v31 = vstv %s1118_s30 }
  0x2a   : > { %1140 = vmatpush3.bf16.xpose.msra.mxu0 %v378_v4  ;;  %1179 = vmatpush3.bf16.xpose.msra.mxu1 %v378_v4  ;;  %v1257_v8 = vld [vmem:[%s1457_s22 + $0x20] sm:$0xff]   ;;  %v366_v13 = vsel %vm331_vm1, %v1252_v12, 0  ;;  %v363_v15 = vsel %vm331_vm1, %v1253_v14, 0  ;;  %v1254_v16 = vld [vmem:[%s1462_s26 + $0x8] sm:$0xff]   ;;  %v1260_v22 = vld [vmem:[%s1457_s22 + $0x10] sm:$0xff]   ;;  %v1550_v27 = vshrl.u32 %v478_v26, 7  ;;  %v515_v32 = vstv %s1119_s3 }
  0x2b   : > { %1189 = vmatprep.subr.msk.bf16.mxu0 %vm331_vm1, %v1249_v3  ;;  %1190 = vmatprep.subr.msk.bf16.mxu1 %vm331_vm1, %v1249_v3  ;;  %v1251_v10 = vld [vmem:[%s1462_s26 + $0x20] sm:$0xff]   ;;  %v360_v17 = vsel %vm331_vm1, %v1254_v16, 0  ;;  %v1258_v20 = vld [vmem:[%s1457_s22 + $0x8] sm:$0xff]   ;;  %v1262_v23 = vld [vmem:[%s1457_s22 + $0x30] sm:$0xff]   ;;  %v514_v29 = vand.u32 127, %v478_v26  ;;  %p1120_p8 = scmp.ne.s32.totalorder %s1382_s9, 1 }
  0x2c   : > { %1155 = vmatprep.mubr.msk.bf16.mxu0 %vm331_vm1, %v1256_v7  ;;  %1163 = vmatprep.mubr.msk.bf16.mxu1 %vm331_vm1, %v1257_v8  ;;  %v369_v11 = vsel %vm331_vm1, %v1251_v10, 0  ;;  %v1255_v18 = vld [vmem:[%s1462_s26] sm:$0xff]   ;;  %v1259_v21 = vld [vmem:[%s1457_s22 + $0x28] sm:$0xff]   ;;  %v1261_v24 = vld [vmem:[%s1457_s22 + $0x18] sm:$0xff]   ;;  %v489_v28 = vadd.s32 80, %v1550_v27  ;;  %v481_v30 = vadd.s32 16, %v1550_v27  ;;  %v496_v37 = vadd.s32 %v1556_v31, %v1550_v27 }
  0x2d   : > { %v357_v19 = vsel %vm331_vm1, %v1255_v18, 0  ;;  %v1263_v25 = vld [vmem:[%s1457_s22 + $0x38] sm:$0xff]   ;;  %v1559_v34 = vadd.s32 %v515_v32, %v514_v29  ;;  %v482_v36 = vadd.s32 24, %v1550_v27  ;;  %v487_v38 = vadd.s32 64, %v1550_v27 }
  0x2e   : > { %v506_v33 = vadd.s32 %v1556_v31, %v489_v28  ;;  %v498_v35 = vadd.s32 %v1556_v31, %v481_v30  ;;  %v490_v40 = vadd.s32 88, %v1550_v27  ;;  %v488_v49 = vadd.s32 72, %v1550_v27 }
  0x2f   : > { %v499_v39 = vadd.s32 %v1556_v31, %v482_v36  ;;  %vm517_vm4 = vcmp.eq.s32.totalorder %v496_v37, %v1559_v34  ;;  %v504_v45 = vadd.s32 %v1556_v31, %v487_v38  ;;  %v480_v50 = vadd.s32 8, %v1550_v27  ;;  %v1664_v38 = vld [vmem:[#allocation2] sm:$0xff] }
  0x30   : > { %vm527_vm2 = vcmp.eq.s32.totalorder %v506_v33, %v1559_v34  ;;  %vm519_vm3 = vcmp.eq.s32.totalorder %v498_v35, %v1559_v34  ;;  %v507_v48 = vadd.s32 %v1556_v31, %v490_v40  ;;  %v485_v51 = vadd.s32 48, %v1550_v27  ;;  %v1656_v33 = vld [vmem:[#allocation2 + $0x10] sm:$0xff] }
  0x31   : > { %vm520_vm5 = vcmp.eq.s32.totalorder %v499_v39, %v1559_v34  ;;  %v486_v54 = vadd.s32 56, %v1550_v27  ;;  %vm525_vm6 = vcmp.eq.s32.totalorder %v504_v45, %v1559_v34  ;;  %v505_v59 = vadd.s32 %v1556_v31, %v488_v49  ;;  %v1666_v39 = vld [vmem:[#allocation2 + $0x18] sm:$0xff] }
  0x32   : > { %1142 = vmatpush3.bf16.xpose.msra.mxu0 %v375_v6  ;;  %1180 = vmatpush3.bf16.xpose.msra.mxu1 %v375_v6  ;;  %vm528_vm7 = vcmp.eq.s32.totalorder %v507_v48, %v1559_v34  ;;  %v497_v60 = vadd.s32 %v1556_v31, %v480_v50  ;;  %v502_v61 = vadd.s32 %v1556_v31, %v485_v51  ;;  %v483_v1 = vadd.s32 32, %v1550_v27  ;;  %v1683_v48 = vld [vmem:[#allocation2 + $0x40] sm:$0xff]  ;;  %v1685_v49 = vld [vmem:[#allocation2 + $0x58] sm:$0xff] }
  0x33   : > { %1191 = vmatprep.subr.msk.bf16.mxu0 %vm331_vm1, %v1250_v5  ;;  %1192 = vmatprep.subr.msk.bf16.mxu1 %vm331_vm1, %v1250_v5  ;;  %v503_v0 = vadd.s32 %v1556_v31, %v486_v54  ;;  %v494_v2 = vadd.s32 120, %v1550_v27  ;;  %vm526_vm8 = vcmp.eq.s32.totalorder %v505_v59, %v1559_v34  ;;  %v1705_v59 = vld [vmem:[#allocation2 + $0x8] sm:$0xff] }
  0x34   : > { %vm518_vm9 = vcmp.eq.s32.totalorder %v497_v60, %v1559_v34  ;;  %vm523_vm10 = vcmp.eq.s32.totalorder %v502_v61, %v1559_v34  ;;  %v500_v8 = vadd.s32 %v1556_v31, %v483_v1 }
  0x35   : > { %vm524_vm11 = vcmp.eq.s32.totalorder %v503_v0, %v1559_v34 }
  0x36   : > { %vm521_vm12 = vcmp.eq.s32.totalorder %v500_v8, %v1559_v34 }
  0x3a   : > { %1144 = vmatpush3.bf16.xpose.msra.mxu0 %v372_v9  ;;  %1181 = vmatpush3.bf16.xpose.msra.mxu1 %v372_v9  ;;  %v511_v9 = vadd.s32 %v1556_v31, %v494_v2  ;;  %v1723_v2 = vld [vmem:[#allocation2 + $0x30] sm:$0xff] }
  0x3b   : > { %1193 = vmatprep.subr.msk.bf16.mxu0 %vm331_vm1, %v1251_v10  ;;  %1194 = vmatprep.subr.msk.bf16.mxu1 %vm331_vm1, %v1251_v10  ;;  %v491_v10 = vadd.s32 96, %v1550_v27 }
  0x3c   : > { %vm532_vm13 = vcmp.eq.s32.totalorder %v511_v9, %v1559_v34 }
  0x42   : > { %1146 = vmatpush3.bf16.xpose.msra.mxu0 %v369_v11  ;;  %1182 = vmatpush3.bf16.xpose.msra.mxu1 %v369_v11 }
  0x43   : > { %1195 = vmatprep.subr.msk.bf16.mxu0 %vm331_vm1, %v1252_v12  ;;  %1196 = vmatprep.subr.msk.bf16.mxu1 %vm331_vm1, %v1252_v12 }
  0x4a   : > { %1148 = vmatpush3.bf16.xpose.msra.mxu0 %v366_v13  ;;  %1183 = vmatpush3.bf16.xpose.msra.mxu1 %v366_v13  ;;  %v484_v13 = vadd.s32 40, %v1550_v27 }
  0x4b   : > { %1197 = vmatprep.subr.msk.bf16.mxu0 %vm331_vm1, %v1253_v14  ;;  %1198 = vmatprep.subr.msk.bf16.mxu1 %vm331_vm1, %v1253_v14 }
  0x52   : > { %1150 = vmatpush3.bf16.xpose.msra.mxu0 %v363_v15  ;;  %1184 = vmatpush3.bf16.xpose.msra.mxu1 %v363_v15 }
  0x53   : > { %1199 = vmatprep.subr.msk.bf16.mxu0 %vm331_vm1, %v1254_v16  ;;  %1200 = vmatprep.subr.msk.bf16.mxu1 %vm331_vm1, %v1254_v16  ;;  %v1402_v16 = vmov 0  }
  0x54   : > { %1246 = vset.pattern.permute.xlu1 %v1402_v16  ;;  %1247 = vset.pattern.permute.xlu0 %v1402_v16  ;;  %v1743_v16 = vld [vmem:[#allocation2 + $0x20] sm:$0xff] }
  0x5a   : > { %1152 = vmatpush3.bf16.xpose.msra.mxu0 %v360_v17  ;;  %1185 = vmatpush3.bf16.xpose.msra.mxu1 %v360_v17 }
  0x5b   : > { %1201 = vmatprep.subr.msk.bf16.mxu0 %vm331_vm1, %v1255_v18  ;;  %1202 = vmatprep.subr.msk.bf16.mxu1 %vm331_vm1, %v1255_v18  ;;  %v508_v18 = vadd.s32 %v1556_v31, %v491_v10 }
  0x5d   : > { %vm529_vm14 = vcmp.eq.s32.totalorder %v508_v18, %v1559_v34 }
  0x62   : > { %1154 = vmatpush3.bf16.xpose.msra.mxu0 %v357_v19  ;;  %1186 = vmatpush3.bf16.xpose.msra.mxu1 %v357_v19  ;;  %v501_v19 = vadd.s32 %v1556_v31, %v484_v13 }
  0x64   : > { %vm522_vm15 = vcmp.eq.s32.totalorder %v501_v19, %v1559_v34 }
  0x69   : > { %1156 = vmatmul.mubr.msk.bf16.vlgmr.msra.gmra.mxu0 %vm331_vm1, %v1258_v20  ;;  %1164 = vmatmul.mubr.msk.bf16.vlgmr.msra.gmra.mxu1 %vm331_vm1, %v1259_v21  ;;  %v493_v20 = vadd.s32 112, %v1550_v27  ;;  %v492_v21 = vadd.s32 104, %v1550_v27 }
  0x6a   : > { %1159 = vmatprep.mubr.msk.bf16.mxu0 %vm331_vm1, %v1260_v22  ;;  %1167 = vmatprep.mubr.msk.bf16.mxu1 %vm331_vm1, %v1262_v23 }
  0x6b   : > { %v509_v26 = vadd.s32 %v1556_v31, %v492_v21 }
  0x71   : > { %1160 = vmatmul.mubr.msk.bf16.gmra.mxu0 %vm331_vm1, %v1261_v24  ;;  %1168 = vmatmul.mubr.msk.bf16.gmra.mxu1 %vm331_vm1, %v1263_v25  ;;  %v510_v25 = vadd.s32 %v1556_v31, %v493_v20  ;;  %vm530_vm1 = vcmp.eq.s32.totalorder %v509_v26, %v1559_v34  ;;  %v1654_v31 = vld [vmem:[#allocation2 + $0x50] sm:$0xff]  ;;  %v1762_v26 = vld [vmem:[#allocation2 + $0x60] sm:$0xff] }
  0x73   : > { %vm531_vm0 = vcmp.eq.s32.totalorder %v510_v25, %v1559_v34 }
 0x129   : > { %v1157_v41 = vpop.f32.mrf.mxu0  ;;  %v1165_v42 = vpop.f32.mrf.mxu1 }
 0x12a   : > { %v1570_v43 = vsel %vm527_vm2, -1e+30, %v1165_v42  ;;  %v1572_v44 = vsel %vm519_vm3, -1e+30, %v1157_v41  ;;  %vm869_vm2 = vcmask 7168  }
 0x12b   : > { %585 = vmax.xlane.f32.xlu0 %v1570_v43  ;;  %v446_v46 = vpop.f32.mrf.mxu1  ;;  %569 = vmax.xlane.f32.xlu1 %v1572_v44  ;;  %v414_v47 = vpop.f32.mrf.mxu0 }
 0x12c   : > { %v1584_v55 = vsel %vm517_vm4, -1e+30, %v414_v47  ;;  %v1598_v3 = vsel %vm525_vm6, -1e+30, %v446_v46 }
 0x12d   : > { %v1158_v52 = vpop.f32.mrf.mxu0  ;;  %v1166_v53 = vpop.f32.mrf.mxu1 }
 0x12e   : > { %v1586_v56 = vsel %vm520_vm5, -1e+30, %v1158_v52  ;;  %v1600_v4 = vsel %vm528_vm7, -1e+30, %v1166_v53 }
 0x12f   : > { %v449_v57 = vpop.f32.mrf.mxu1  ;;  %565 = vmax.xlane.f32.xlu0 %v1584_v55  ;;  %571 = vmax.xlane.f32.xlu1 %v1586_v56  ;;  %v417_v58 = vpop.f32.mrf.mxu0 }
 0x130   : > { %v1611_v11 = vsel %vm526_vm8, -1e+30, %v449_v57  ;;  %v1613_v12 = vsel %vm518_vm9, -1e+30, %v417_v58  ;;  %v1703_v58 = vld [vmem:[#allocation2 + $0x48] sm:$0xff] }
 0x131   : > { %v1161_v62 = vpop.f32.mrf.mxu0  ;;  %v1169_v63 = vpop.f32.mrf.mxu1 }
 0x132   : > { %v1618_v14 = vsel %vm523_vm10, -1e+30, %v1161_v62  ;;  %v1648_v30 = vsel %vm531_vm0, -1e+30, %v1169_v63 }
 0x133   : > { %581 = vmax.xlane.f32.xlu0 %v1598_v3  ;;  %587 = vmax.xlane.f32.xlu1 %v1600_v4  ;;  %v430_v5 = vpop.f32.mrf.mxu0  ;;  %v462_v7 = vpop.f32.mrf.mxu1 }
 0x134   : > { %v1630_v22 = vsel %vm521_vm12, -1e+30, %v430_v5  ;;  %v1640_v28 = vsel %vm529_vm14, -1e+30, %v462_v7  ;;  %v1725_v5 = vld [vmem:[#allocation2 + $0x38] sm:$0xff] }
 0x135   : > { %v1162_v6 = vpop.f32.mrf.mxu0  ;;  %v1170_v17 = vpop.f32.mrf.mxu1 }
 0x136   : > { %v1620_v15 = vsel %vm524_vm11, -1e+30, %v1162_v6  ;;  %v1632_v23 = vsel %vm532_vm13, -1e+30, %v1170_v17  ;;  %v1745_v17 = vld [vmem:[#allocation2 + $0x78] sm:$0xff] }
 0x137   : > { %583 = vmax.xlane.f32.xlu1 %v1611_v11  ;;  %567 = vmax.xlane.f32.xlu0 %v1613_v12  ;;  %v433_v24 = vpop.f32.mrf.mxu0  ;;  %v465_v29 = vpop.f32.mrf.mxu1 }
 0x138   : > { %v1642_v27 = vsel %vm522_vm15, -1e+30, %v433_v24  ;;  %v1650_v32 = vsel %vm530_vm1, -1e+30, %v465_v29  ;;  %v1764_v29 = vld [vmem:[#allocation2 + $0x28] sm:$0xff] }
 0x13b   : > { %577 = vmax.xlane.f32.xlu0 %v1618_v14  ;;  %579 = vmax.xlane.f32.xlu1 %v1620_v15 }
 0x13f   : > { %573 = vmax.xlane.f32.xlu0 %v1630_v22  ;;  %595 = vmax.xlane.f32.xlu1 %v1632_v23 }
 0x143   : > { %589 = vmax.xlane.f32.xlu0 %v1640_v28  ;;  %575 = vmax.xlane.f32.xlu1 %v1642_v27 }
 0x147   : > { %593 = vmax.xlane.f32.xlu0 %v1648_v30  ;;  %591 = vmax.xlane.f32.xlu1 %v1650_v32 }
 0x1b4   : > { %v586_v35 = vpop.xlane.xlu0 %585  ;;  %v570_v36 = vpop.xlane.xlu1 %569 }
 0x1b5   : > { %v1659_v37 = vmax.f32 %v1654_v31, %v586_v35  ;;  %v1662_v34 = vmax.f32 %v1656_v33, %v570_v36 }
 0x1b7   : > { %896 = vst.msk [vmem:[#allocation2 + $0x50] sm:$0xff] %vm869_vm2, %v1659_v37  ;;  %v615_v41 = vsub.f32 %v1656_v33, %v1662_v34  ;;  %888 = vst.msk [vmem:[#allocation2 + $0x10] sm:$0xff] %vm869_vm2, %v1662_v34  ;;  %673 = vperm.xlu1 %1246, %v1662_v34  }
 0x1b8   : > { %v566_v42 = vpop.xlane.xlu0 %565  ;;  %v572_v45 = vpop.xlane.xlu1 %571 }
 0x1b9   : > { %v1678_v46 = vmax.f32 %v1664_v38, %v566_v42  ;;  %v1681_v47 = vmax.f32 %v1666_v39, %v572_v45 }
 0x1bb   : > { %v613_v50 = vsub.f32 %v1664_v38, %v1678_v46  ;;  %886 = vst.msk [vmem:[#allocation2] sm:$0xff] %vm869_vm2, %v1678_v46  ;;  %889 = vst.msk [vmem:[#allocation2 + $0x18] sm:$0xff] %vm869_vm2, %v1681_v47  ;;  %663 = vperm.xlu0 %1247, %v1678_v46   ;;  %713 = vperm.xlu1 %1246, %v1659_v37   ;;  %v791_v46 = vld [vmem:[#allocation3 + $0x10] sm:$0xff] }
 0x1bc   : > { %v582_v52 = vpop.xlane.xlu0 %581  ;;  %v588_v53 = vpop.xlane.xlu1 %587 }
 0x1bd   : > { %v1698_v54 = vmax.f32 %v1683_v48, %v582_v52  ;;  %v1701_v57 = vmax.f32 %v1685_v49, %v588_v53 }
 0x1bf   : > { %894 = vst.msk [vmem:[#allocation2 + $0x40] sm:$0xff] %vm869_vm2, %v1698_v54  ;;  %897 = vst.msk [vmem:[#allocation2 + $0x58] sm:$0xff] %vm869_vm2, %v1701_v57  ;;  %718 = vperm.xlu0 %1247, %v1701_v57   ;;  %703 = vperm.xlu1 %1246, %v1698_v54  }
 0x1c0   : > { %v584_v62 = vpop.xlane.xlu1 %583  ;;  %v568_v63 = vpop.xlane.xlu0 %567 }
 0x1c1   : > { %v1718_v0 = vmax.f32 %v1703_v58, %v584_v62  ;;  %v1721_v1 = vmax.f32 %v1705_v59, %v568_v63  ;;  %v1781_v62 = vld [vmem:[#allocation2 + $0x70] sm:$0xff]  ;;  %v1783_v63 = vld [vmem:[#allocation2 + $0x68] sm:$0xff] }
 0x1c3   : > { %895 = vst.msk [vmem:[#allocation2 + $0x48] sm:$0xff] %vm869_vm2, %v1718_v0  ;;  %887 = vst.msk [vmem:[#allocation2 + $0x8] sm:$0xff] %vm869_vm2, %v1721_v1  ;;  %708 = vperm.xlu0 %1247, %v1718_v0   ;;  %678 = vperm.xlu1 %1246, %v1681_v47   ;;  %v1948_v34 = vsub.f32 %v1705_v59, %v1721_v1 }
 0x1c4   : > { %v578_v8 = vpop.xlane.xlu0 %577  ;;  %v580_v9 = vpop.xlane.xlu1 %579 }
 0x1c5   : > { %v1738_v10 = vmax.f32 %v1723_v2, %v578_v8  ;;  %v1741_v13 = vmax.f32 %v1725_v5, %v580_v9  ;;  %v631_v38 = vmul.f32 1.442695, %v1948_v34 }
 0x1c7   : > { %892 = vst.msk [vmem:[#allocation2 + $0x30] sm:$0xff] %vm869_vm2, %v1738_v10  ;;  %893 = vst.msk [vmem:[#allocation2 + $0x38] sm:$0xff] %vm869_vm2, %v1741_v13  ;;  %668 = vperm.xlu1 %1246, %v1721_v1  }
 0x1c8   : > { %v574_v20 = vpop.xlane.xlu0 %573  ;;  %v596_v21 = vpop.xlane.xlu1 %595 }
 0x1c9   : > { %v1757_v24 = vmax.f32 %v1743_v16, %v574_v20  ;;  %v1760_v25 = vmax.f32 %v1745_v17, %v596_v21 }
 0x1cb   : > { %890 = vst.msk [vmem:[#allocation2 + $0x20] sm:$0xff] %vm869_vm2, %v1757_v24  ;;  %901 = vst.msk [vmem:[#allocation2 + $0x78] sm:$0xff] %vm869_vm2, %v1760_v25  ;;  %693 = vperm.xlu1 %1246, %v1738_v10  }
 0x1cc   : > { %v590_v42 = vpop.xlane.xlu0 %589  ;;  %v576_v45 = vpop.xlane.xlu1 %575 }
 0x1cd   : > { %v1776_v52 = vmax.f32 %v1762_v26, %v590_v42  ;;  %v1779_v53 = vmax.f32 %v1764_v29, %v576_v45 }
 0x1cf   : > { %898 = vst.msk [vmem:[#allocation2 + $0x60] sm:$0xff] %vm869_vm2, %v1776_v52  ;;  %891 = vst.msk [vmem:[#allocation2 + $0x28] sm:$0xff] %vm869_vm2, %v1779_v53  ;;  %683 = vperm.xlu1 %1246, %v1757_v24  }
 0x1d0   : > { %v594_v20 = vpop.xlane.xlu0 %593  ;;  %v592_v21 = vpop.xlane.xlu1 %591 }
 0x1d1   : > { %v1795_v42 = vmax.f32 %v1781_v62, %v594_v20  ;;  %v1798_v45 = vmax.f32 %v1783_v63, %v592_v21 }
 0x1d3   : > { %900 = vst.msk [vmem:[#allocation2 + $0x70] sm:$0xff] %vm869_vm2, %v1795_v42  ;;  %899 = vst.msk [vmem:[#allocation2 + $0x68] sm:$0xff] %vm869_vm2, %v1798_v45  ;;  %723 = vperm.xlu1 %1246, %v1776_v52   ;;  %728 = vperm.xlu0 %1247, %v1798_v45  }
 0x1d7   : > { %698 = vperm.xlu1 %1246, %v1741_v13   ;;  %738 = vperm.xlu0 %1247, %v1760_v25  }
 0x1db   : > { %688 = vperm.xlu1 %1246, %v1779_v53  }
 0x1df   : > { %733 = vperm.xlu1 %1246, %v1795_v42  }
 0x232   : > { %v674_v20 = vpop.permute.xlu1 %673 }
 0x233   : > { %v743_v21 = vsub.f32 %v1572_v44, %v674_v20 }
 0x235   : > { %v761_v36 = vmul.f32 1.442695, %v743_v21 }
 0x236   : > { %v664_v9 = vpop.permute.xlu0 %663  ;;  %v714_v19 = vpop.permute.xlu1 %713 }
 0x237   : > { %1264 = vpow2.f32 %v761_v36  ;;  %v741_v8 = vsub.f32 %v1584_v55, %v664_v9  ;;  %v751_v35 = vsub.f32 %v1570_v43, %v714_v19 }
 0x239   : > { %v757_v6 = vmul.f32 1.442695, %v741_v8  ;;  %v777_v18 = vmul.f32 1.442695, %v751_v35 }
 0x23a   : > { %v704_v61 = vpop.permute.xlu1 %703  ;;  %v719_v7 = vpop.permute.xlu0 %718 }
 0x23b   : > { %1266 = vpow2.f32 %v757_v6  ;;  %v749_v51 = vsub.f32 %v1598_v3, %v704_v61  ;;  %v752_v20 = vsub.f32 %v1600_v4, %v719_v7 }
 0x23c   : > { %1268 = vpow2.f32 %v777_v18 }
 0x23d   : > { %v773_v60 = vmul.f32 1.442695, %v749_v51  ;;  %v779_v35 = vmul.f32 1.442695, %v752_v20 }
 0x23e   : > { %v679_v40 = vpop.permute.xlu1 %678  ;;  %v709_v36 = vpop.permute.xlu0 %708 }
 0x23f   : > { %v744_v44 = vsub.f32 %v1586_v56, %v679_v40  ;;  %1270 = vpow2.f32 %v773_v60  ;;  %v750_v6 = vsub.f32 %v1611_v11, %v709_v36 }
 0x241   : > { %v763_v21 = vmul.f32 1.442695, %v744_v44  ;;  %v775_v4 = vmul.f32 1.442695, %v750_v6 }
 0x242   : > { %v669_v55 = vpop.permute.xlu1 %668 }
 0x243   : > { %v742_v43 = vsub.f32 %v1613_v12, %v669_v55  ;;  %1272 = vpow2.f32 %v763_v21 }
 0x244   : > { %v1265_v19 = vpop.eup %1264 }
 0x245   : > { %v759_v8 = vmul.f32 1.442695, %v742_v43  ;;  %825 = vadd.xlane.f32.xlu0 %v1265_v19 }
 0x246   : > { %v694_v3 = vpop.permute.xlu1 %693 }
 0x247   : > { %1274 = vpow2.f32 %v759_v8  ;;  %v747_v51 = vsub.f32 %v1618_v14, %v694_v3 }
 0x248   : > { %v1267_v56 = vpop.eup %1266  ;;  %1276 = vpow2.f32 %v779_v35 }
 0x249   : > { %v1269_v40 = vpop.eup %1268  ;;  %v769_v60 = vmul.f32 1.442695, %v747_v51  ;;  %821 = vadd.xlane.f32.xlu1 %v1267_v56 }
 0x24a   : > { %841 = vadd.xlane.f32.xlu0 %v1269_v40  ;;  %v684_v61 = vpop.permute.xlu1 %683 }
 0x24b   : > { %1278 = vpow2.f32 %v769_v60  ;;  %v745_v12 = vsub.f32 %v1630_v22, %v684_v61 }
 0x24c   : > { %1280 = vpow2.f32 %v775_v4  ;;  %v1271_v11 = vpop.eup %1270 }
 0x24d   : > { %v765_v7 = vmul.f32 1.442695, %v745_v12 }
 0x24e   : > { %837 = vadd.xlane.f32.xlu0 %v1271_v11  ;;  %v724_v18 = vpop.permute.xlu1 %723  ;;  %v729_v36 = vpop.permute.xlu0 %728 }
 0x24f   : > { %1282 = vpow2.f32 %v765_v7  ;;  %v753_v9 = vsub.f32 %v1640_v28, %v724_v18  ;;  %v754_v8 = vsub.f32 %v1650_v32, %v729_v36 }
 0x250   : > { %v1273_v14 = vpop.eup %1272 }
 0x251   : > { %v781_v44 = vmul.f32 1.442695, %v753_v9  ;;  %827 = vadd.xlane.f32.xlu1 %v1273_v14  ;;  %v783_v40 = vmul.f32 1.442695, %v754_v8  ;;  %v629_v9 = vmul.f32 1.442695, %v613_v50  ;;  %v1945_v14 = vsub.f32 %v1654_v31, %v1659_v37 }
 0x252   : > { %v699_v20 = vpop.permute.xlu1 %698  ;;  %v739_v3 = vpop.permute.xlu0 %738  ;;  %v1949_v31 = vsub.f32 %v1685_v49, %v1701_v57  ;;  %v1952_v49 = vsub.f32 %v1743_v16, %v1757_v24 }
 0x253   : > { %v748_v21 = vsub.f32 %v1620_v15, %v699_v20  ;;  %1284 = vpow2.f32 %v781_v44  ;;  %v756_v60 = vsub.f32 %v1632_v23, %v739_v3  ;;  %v633_v23 = vmul.f32 1.442695, %v615_v41 }
 0x254   : > { %v1275_v55 = vpop.eup %1274  ;;  %v649_v44 = vmul.f32 1.442695, %v1945_v14  ;;  %v1946_v20 = vsub.f32 %v1683_v48, %v1698_v54  ;;  %v651_v37 = vmul.f32 1.442695, %v1949_v31  ;;  %v1950_v48 = vsub.f32 %v1723_v2, %v1738_v10 }
 0x255   : > { %v1277_v43 = vpop.eup %1276  ;;  %v771_v19 = vmul.f32 1.442695, %v748_v21  ;;  %823 = vadd.xlane.f32.xlu0 %v1275_v55  ;;  %v1947_v21 = vsub.f32 %v1666_v39, %v1681_v47  ;;  %v1951_v47 = vsub.f32 %v1703_v58, %v1718_v0  ;;  %v789_v55 = vld [vmem:[#allocation3] sm:$0xff]  ;;  %v637_v57 = vmul.f32 1.442695, %v1952_v49 }
 0x256   : > { %843 = vadd.xlane.f32.xlu1 %v1277_v43  ;;  %v689_v22 = vpop.permute.xlu1 %688  ;;  %v645_v36 = vmul.f32 1.442695, %v1946_v20  ;;  %v641_v50 = vmul.f32 1.442695, %v1950_v48  ;;  %v797_v0 = vld [vmem:[#allocation3 + $0x40] sm:$0xff]  ;;  %v1953_v3 = vsub.f32 %v1762_v26, %v1776_v52  ;;  %v800_v52 = vld [vmem:[#allocation3 + $0x58] sm:$0xff] }
 0x257   : > { %v746_v35 = vsub.f32 %v1642_v27, %v689_v22  ;;  %1286 = vpow2.f32 %v771_v19  ;;  %v787_v27 = vmul.f32 1.442695, %v756_v60  ;;  %v635_v33 = vmul.f32 1.442695, %v1947_v21  ;;  %v799_v22 = vld [vmem:[#allocation3 + $0x50] sm:$0xff] }
 0x258   : > { %v1279_v6 = vpop.eup %1278  ;;  %v647_v59 = vmul.f32 1.442695, %v1951_v47  ;;  %v1954_v60 = vsub.f32 %v1725_v5, %v1741_v13 }
 0x259   : > { %v1281_v28 = vpop.eup %1280  ;;  %v767_v51 = vmul.f32 1.442695, %v746_v35  ;;  %833 = vadd.xlane.f32.xlu0 %v1279_v6 }
 0x25a   : > { %839 = vadd.xlane.f32.xlu1 %v1281_v28  ;;  %v734_v56 = vpop.permute.xlu1 %733 }
 0x25b   : > { %1288 = vpow2.f32 %v767_v51  ;;  %v755_v15 = vsub.f32 %v1648_v30, %v734_v56  ;;  %v653_v51 = vmul.f32 1.442695, %v1953_v3 }
 0x25c   : > { %v1283_v4 = vpop.eup %1282 }
 0x25d   : > { %v785_v61 = vmul.f32 1.442695, %v755_v15  ;;  %829 = vadd.xlane.f32.xlu0 %v1283_v4  ;;  %v792_v15 = vld [vmem:[#allocation3 + $0x18] sm:$0xff] }
 0x25f   : > { %1290 = vpow2.f32 %v785_v61  ;;  %v643_v61 = vmul.f32 1.442695, %v1954_v60 }
 0x260   : > { %1292 = vpow2.f32 %v783_v40  ;;  %v1285_v32 = vpop.eup %1284 }
 0x261   : > { %845 = vadd.xlane.f32.xlu0 %v1285_v32  ;;  %1294 = vpow2.f32 %v787_v27  ;;  %v790_v32 = vld [vmem:[#allocation3 + $0x8] sm:$0xff] }
 0x262   : > { %1296 = vpow2.f32 %v633_v23 }
 0x263   : > { %1298 = vpow2.f32 %v629_v9  ;;  %v795_v9 = vld [vmem:[#allocation3 + $0x30] sm:$0xff] }
 0x264   : > { %v1287_v12 = vpop.eup %1286  ;;  %1300 = vpow2.f32 %v649_v44 }
 0x265   : > { %835 = vadd.xlane.f32.xlu1 %v1287_v12  ;;  %1302 = vpow2.f32 %v645_v36  ;;  %v798_v36 = vld [vmem:[#allocation3 + $0x48] sm:$0xff] }
 0x266   : > { %1304 = vpow2.f32 %v635_v33  ;;  %v1956_v33 = vsub.f32 %v1781_v62, %v1795_v42  ;;  %v1958_v42 = vsub.f32 %v1745_v17, %v1760_v25 }
 0x267   : > { %1306 = vpow2.f32 %v631_v38 }
 0x268   : > { %v1289_v11 = vpop.eup %1288  ;;  %1308 = vpow2.f32 %v651_v37  ;;  %v657_v34 = vmul.f32 1.442695, %v1956_v33 }
 0x269   : > { %831 = vadd.xlane.f32.xlu1 %v1289_v11  ;;  %1310 = vpow2.f32 %v641_v50 }
 0x26a   : > { %1312 = vpow2.f32 %v647_v59  ;;  %v801_v59 = vld [vmem:[#allocation3 + $0x60] sm:$0xff] }
 0x26b   : > { %1314 = vpow2.f32 %v637_v57  ;;  %v794_v57 = vld [vmem:[#allocation3 + $0x28] sm:$0xff] }
 0x26c   : > { %v1291_v7 = vpop.eup %1290  ;;  %1316 = vpow2.f32 %v653_v51 }
 0x26d   : > { %v1293_v18 = vpop.eup %1292  ;;  %849 = vadd.xlane.f32.xlu0 %v1291_v7  ;;  %1318 = vpow2.f32 %v643_v61 }
 0x26e   : > { %847 = vadd.xlane.f32.xlu1 %v1293_v18  ;;  %v1295_v30 = vpop.eup %1294 }
 0x26f   : > { %v1297_v41 = vpop.eup %1296 }
 0x270   : > { %v807_v54 = vmul.f32 %v1297_v41, %v791_v46  ;;  %v1299_v39 = vpop.eup %1298  ;;  %v793_v46 = vld [vmem:[#allocation3 + $0x20] sm:$0xff] }
 0x271   : > { %v1301_v43 = vpop.eup %1300  ;;  %v805_v2 = vmul.f32 %v1299_v39, %v789_v55  ;;  %v659_v39 = vmul.f32 1.442695, %v1958_v42 }
 0x272   : > { %851 = vadd.xlane.f32.xlu1 %v1295_v30  ;;  %v815_v10 = vmul.f32 %v1301_v43, %v799_v22  ;;  %v1303_v6 = vpop.eup %1302  ;;  %v1955_v30 = vsub.f32 %v1764_v29, %v1779_v53  ;;  %v1957_v29 = vsub.f32 %v1783_v63, %v1798_v45 }
 0x273   : > { %v813_v16 = vmul.f32 %v1303_v6, %v797_v0  ;;  %v1305_v24 = vpop.eup %1304  ;;  %v803_v6 = vld [vmem:[#allocation3 + $0x70] sm:$0xff]  ;;  %v802_v0 = vld [vmem:[#allocation3 + $0x68] sm:$0xff] }
 0x274   : > { %v1307_v40 = vpop.eup %1306  ;;  %v808_v27 = vmul.f32 %v1305_v24, %v792_v15  ;;  %v639_v23 = vmul.f32 1.442695, %v1955_v30  ;;  %v655_v53 = vmul.f32 1.442695, %v1957_v29 }
 0x275   : > { %v1309_v12 = vpop.eup %1308  ;;  %v806_v7 = vmul.f32 %v1307_v40, %v790_v32 }
 0x276   : > { %v1311_v18 = vpop.eup %1310  ;;  %v816_v13 = vmul.f32 %v1309_v12, %v800_v52  ;;  %1320 = vpow2.f32 %v639_v23 }
 0x277   : > { %v1313_v14 = vpop.eup %1312  ;;  %v811_v38 = vmul.f32 %v1311_v18, %v795_v9  ;;  %1322 = vpow2.f32 %v657_v34 }
 0x278   : > { %v1315_v41 = vpop.eup %1314  ;;  %v814_v37 = vmul.f32 %v1313_v14, %v798_v36  ;;  %1324 = vpow2.f32 %v655_v53 }
 0x279   : > { %v809_v62 = vmul.f32 %v1315_v41, %v793_v46  ;;  %v1317_v45 = vpop.eup %1316  ;;  %1326 = vpow2.f32 %v659_v39 }
 0x27a   : > { %v1319_v55 = vpop.eup %1318 }
 0x283   : > { %v1321_v17 = vpop.eup %1320 }
 0x2ce   : > { %v826_v1 = vpop.xlane.xlu0 %825 }
 0x2cf   : > { %v855_v19 = vadd.f32 %v826_v1, %v807_v54  ;;  %v817_v1 = vmul.f32 %v1317_v45, %v801_v59 }
 0x2d1   : > { %872 = vst.msk [vmem:[#allocation3 + $0x10] sm:$0xff] %vm869_vm2, %v855_v19  ;;  %v796_v19 = vld [vmem:[#allocation3 + $0x38] sm:$0xff] }
 0x2d2   : > { %v822_v35 = vpop.xlane.xlu1 %821  ;;  %v812_v49 = vmul.f32 %v1319_v55, %v796_v19 }
 0x2d3   : > { %v842_v8 = vpop.xlane.xlu0 %841  ;;  %v853_v58 = vadd.f32 %v822_v35, %v805_v2  ;;  %v810_v35 = vmul.f32 %v1321_v17, %v794_v57 }
 0x2d4   : > { %v863_v28 = vadd.f32 %v842_v8, %v815_v10  ;;  %v1323_v10 = vpop.eup %1322 }
 0x2d5   : > { %870 = vst.msk [vmem:[#allocation3] sm:$0xff] %vm869_vm2, %v853_v58  ;;  %v1325_v8 = vpop.eup %1324  ;;  %v819_v3 = vmul.f32 %v1323_v10, %v803_v6 }
 0x2d6   : > { %880 = vst.msk [vmem:[#allocation3 + $0x50] sm:$0xff] %vm869_vm2, %v863_v28  ;;  %v1327_v24 = vpop.eup %1326 }
 0x2d7   : > { %v838_v56 = vpop.xlane.xlu0 %837 }
 0x2d8   : > { %v861_v4 = vadd.f32 %v838_v56, %v813_v16  ;;  %v818_v16 = vmul.f32 %v1325_v8, %v802_v0 }
 0x2da   : > { %878 = vst.msk [vmem:[#allocation3 + $0x40] sm:$0xff] %vm869_vm2, %v861_v4  ;;  %v828_v26 = vpop.xlane.xlu1 %827  ;;  %v804_v4 = vld [vmem:[#allocation3 + $0x78] sm:$0xff] }
 0x2db   : > { %v856_v11 = vadd.f32 %v828_v26, %v808_v27  ;;  %v820_v60 = vmul.f32 %v1327_v24, %v804_v4 }
 0x2dd   : > { %873 = vst.msk [vmem:[#allocation3 + $0x18] sm:$0xff] %vm869_vm2, %v856_v11 }
 0x2de   : > { %v824_v5 = vpop.xlane.xlu0 %823 }
 0x2df   : > { %v854_v44 = vadd.f32 %v824_v5, %v806_v7  ;;  %v844_v20 = vpop.xlane.xlu1 %843 }
 0x2e0   : > { %v864_v21 = vadd.f32 %v844_v20, %v816_v13 }
 0x2e1   : > { %871 = vst.msk [vmem:[#allocation3 + $0x8] sm:$0xff] %vm869_vm2, %v854_v44 }
 0x2e2   : > { %881 = vst.msk [vmem:[#allocation3 + $0x58] sm:$0xff] %vm869_vm2, %v864_v21  ;;  %v834_v31 = vpop.xlane.xlu0 %833 }
 0x2e3   : > { %v859_v48 = vadd.f32 %v834_v31, %v811_v38  ;;  %v840_v50 = vpop.xlane.xlu1 %839 }
 0x2e4   : > { %v862_v54 = vadd.f32 %v840_v50, %v814_v37 }
 0x2e5   : > { %876 = vst.msk [vmem:[#allocation3 + $0x30] sm:$0xff] %vm869_vm2, %v859_v48 }
 0x2e6   : > { %879 = vst.msk [vmem:[#allocation3 + $0x48] sm:$0xff] %vm869_vm2, %v862_v54  ;;  %v830_v63 = vpop.xlane.xlu0 %829 }
 0x2e7   : > { %v857_v47 = vadd.f32 %v830_v63, %v809_v62 }
 0x2e9   : > { %874 = vst.msk [vmem:[#allocation3 + $0x20] sm:$0xff] %vm869_vm2, %v857_v47 }
 0x2ea   : > { %v846_v43 = vpop.xlane.xlu0 %845 }
 0x2eb   : > { %v865_v22 = vadd.f32 %v846_v43, %v817_v1 }
 0x2ed   : > { %882 = vst.msk [vmem:[#allocation3 + $0x60] sm:$0xff] %vm869_vm2, %v865_v22 }
 0x2ee   : > { %v836_v25 = vpop.xlane.xlu1 %835 }
 0x2ef   : > { %v860_v2 = vadd.f32 %v836_v25, %v812_v49 }
 0x2f1   : > { %877 = vst.msk [vmem:[#allocation3 + $0x38] sm:$0xff] %vm869_vm2, %v860_v2 }
 0x2f2   : > { %v832_v58 = vpop.xlane.xlu1 %831 }
 0x2f3   : > { %v858_v28 = vadd.f32 %v832_v58, %v810_v35 }
 0x2f5   : > { %875 = vst.msk [vmem:[#allocation3 + $0x28] sm:$0xff] %vm869_vm2, %v858_v28 }
 0x2f6   : > { %v850_v51 = vpop.xlane.xlu0 %849 }
 0x2f7   : > { %v867_v56 = vadd.f32 %v850_v51, %v819_v3  ;;  %v848_v15 = vpop.xlane.xlu1 %847 }
 0x2f8   : > { %v866_v40 = vadd.f32 %v848_v15, %v818_v16 }
 0x2f9   : > { %884 = vst.msk [vmem:[#allocation3 + $0x70] sm:$0xff] %vm869_vm2, %v867_v56 }
 0x2fa   : > { %883 = vst.msk [vmem:[#allocation3 + $0x68] sm:$0xff] %vm869_vm2, %v866_v40  ;;  %905 = sbr.rel (%p1120_p8) target bundleno = 802 (0x322), region = 36 }
 0x2fb   : > { %v852_v61 = vpop.xlane.xlu1 %851 }
 0x2fc   : > { %v868_v27 = vadd.f32 %v852_v61, %v820_v60 }
 0x2fe   : > { %885 = vst.msk [vmem:[#allocation3 + $0x78] sm:$0xff] %vm869_vm2, %v868_v27 }
 0x2ff   : > { %v922_v32 = vld [vmem:[#allocation3] sm:$0xff]  ;;  %v923_v12 = vld [vmem:[#allocation3 + $0x8] sm:$0xff]  ;;  %v924_v26 = vld [vmem:[#allocation3 + $0x10] sm:$0xff] }
 0x300   : > { %1328 = vlog2.f32 %v922_v32  ;;  %v925_v52 = vld [vmem:[#allocation3 + $0x18] sm:$0xff]  ;;  %v926_v11 = vld [vmem:[#allocation3 + $0x20] sm:$0xff]  ;;  %v927_v7 = vld [vmem:[#allocation3 + $0x28] sm:$0xff] }
 0x301   : > { %1330 = vlog2.f32 %v923_v12  ;;  %v928_v18 = vld [vmem:[#allocation3 + $0x30] sm:$0xff]  ;;  %v929_v30 = vld [vmem:[#allocation3 + $0x38] sm:$0xff]  ;;  %v930_v23 = vld [vmem:[#allocation3 + $0x40] sm:$0xff] }
 0x302   : > { %1332 = vlog2.f32 %v924_v26  ;;  %v931_v5 = vld [vmem:[#allocation3 + $0x48] sm:$0xff]  ;;  %v932_v13 = vld [vmem:[#allocation3 + $0x50] sm:$0xff]  ;;  %v933_v9 = vld [vmem:[#allocation3 + $0x58] sm:$0xff] }
 0x303   : > { %1334 = vlog2.f32 %v925_v52  ;;  %v934_v14 = vld [vmem:[#allocation3 + $0x60] sm:$0xff]  ;;  %v935_v44 = vld [vmem:[#allocation3 + $0x68] sm:$0xff]  ;;  %v936_v20 = vld [vmem:[#allocation3 + $0x70] sm:$0xff] }
 0x304   : > { %1336 = vlog2.f32 %v926_v11  ;;  %v906_v33 = vld [vmem:[#allocation2] sm:$0xff]  ;;  %v907_v41 = vld [vmem:[#allocation2 + $0x8] sm:$0xff]  ;;  %v908_v31 = vld [vmem:[#allocation2 + $0x10] sm:$0xff] }
 0x305   : > { %1338 = vlog2.f32 %v927_v7  ;;  %v937_v36 = vld [vmem:[#allocation3 + $0x78] sm:$0xff]  ;;  %v910_v39 = vld [vmem:[#allocation2 + $0x20] sm:$0xff]  ;;  %v911_v59 = vld [vmem:[#allocation2 + $0x28] sm:$0xff] }
 0x306   : > { %1340 = vlog2.f32 %v928_v18  ;;  %v909_v50 = vld [vmem:[#allocation2 + $0x18] sm:$0xff]  ;;  %v912_v19 = vld [vmem:[#allocation2 + $0x30] sm:$0xff]  ;;  %v914_v35 = vld [vmem:[#allocation2 + $0x40] sm:$0xff] }
 0x307   : > { %1342 = vlog2.f32 %v929_v30  ;;  %v913_v25 = vld [vmem:[#allocation2 + $0x38] sm:$0xff]  ;;  %v915_v0 = vld [vmem:[#allocation2 + $0x48] sm:$0xff]  ;;  %v916_v16 = vld [vmem:[#allocation2 + $0x50] sm:$0xff] }
 0x308   : > { %1344 = vlog2.f32 %v930_v23  ;;  %v917_v4 = vld [vmem:[#allocation2 + $0x58] sm:$0xff]  ;;  %v918_v27 = vld [vmem:[#allocation2 + $0x60] sm:$0xff]  ;;  %v919_v52 = vld [vmem:[#allocation2 + $0x68] sm:$0xff] }
 0x309   : > { %1346 = vlog2.f32 %v931_v5  ;;  %v920_v30 = vld [vmem:[#allocation2 + $0x70] sm:$0xff] }
 0x30a   : > { %1348 = vlog2.f32 %v932_v13 }
 0x30b   : > { %1350 = vlog2.f32 %v933_v9  ;;  %v921_v9 = vld [vmem:[#allocation2 + $0x78] sm:$0xff] }
 0x30c   : > { %1352 = vlog2.f32 %v934_v14 }
 0x30d   : > { %v1329_v21 = vpop.eup %1328  ;;  %1354 = vlog2.f32 %v935_v44 }
 0x30e   : > { %v1331_v34 = vpop.eup %1330  ;;  %v939_v38 = vmul.f32 0.6931472, %v1329_v21  ;;  %1356 = vlog2.f32 %v936_v20 }
 0x30f   : > { %v1333_v29 = vpop.eup %1332  ;;  %v941_v53 = vmul.f32 0.6931472, %v1331_v34  ;;  %1358 = vlog2.f32 %v937_v36 }
 0x310   : > { %v1335_v37 = vpop.eup %1334  ;;  %v970_v46 = vadd.f32 %v939_v38, %v906_v33  ;;  %v943_v48 = vmul.f32 0.6931472, %v1333_v29 }
 0x311   : > { %v1337_v54 = vpop.eup %1336  ;;  %v971_v62 = vadd.f32 %v941_v53, %v907_v41  ;;  %v945_v42 = vmul.f32 0.6931472, %v1335_v37 }
 0x312   : > { %v1339_v63 = vpop.eup %1338  ;;  %986 = vst.msk [vmem:[%s1467_s29] sm:$0xff] %vm869_vm2, %v970_v46  ;;  %v972_v45 = vadd.f32 %v943_v48, %v908_v31  ;;  %v947_v47 = vmul.f32 0.6931472, %v1337_v54 }
 0x313   : > { %v1341_v1 = vpop.eup %1340  ;;  %987 = vst.msk [vmem:[%s1467_s29 + $0x8] sm:$0xff] %vm869_vm2, %v971_v62  ;;  %v973_v55 = vadd.f32 %v945_v42, %v909_v50  ;;  %v949_v43 = vmul.f32 0.6931472, %v1339_v63 }
 0x314   : > { %v1343_v22 = vpop.eup %1342  ;;  %988 = vst.msk [vmem:[%s1467_s29 + $0x10] sm:$0xff] %vm869_vm2, %v972_v45  ;;  %v974_v49 = vadd.f32 %v947_v47, %v910_v39  ;;  %v951_v17 = vmul.f32 0.6931472, %v1341_v1 }
 0x315   : > { %v1345_v57 = vpop.eup %1344  ;;  %989 = vst.msk [vmem:[%s1467_s29 + $0x18] sm:$0xff] %vm869_vm2, %v973_v55  ;;  %v975_v2 = vadd.f32 %v949_v43, %v911_v59  ;;  %v953_v10 = vmul.f32 0.6931472, %v1343_v22 }
 0x316   : > { %v1347_v6 = vpop.eup %1346  ;;  %990 = vst.msk [vmem:[%s1467_s29 + $0x20] sm:$0xff] %vm869_vm2, %v974_v49  ;;  %v976_v8 = vadd.f32 %v951_v17, %v912_v19  ;;  %v955_v58 = vmul.f32 0.6931472, %v1345_v57 }
 0x317   : > { %v1349_v28 = vpop.eup %1348  ;;  %991 = vst.msk [vmem:[%s1467_s29 + $0x28] sm:$0xff] %vm869_vm2, %v975_v2  ;;  %v977_v3 = vadd.f32 %v953_v10, %v913_v25  ;;  %v957_v51 = vmul.f32 0.6931472, %v1347_v6 }
 0x318   : > { %v1351_v24 = vpop.eup %1350  ;;  %992 = vst.msk [vmem:[%s1467_s29 + $0x30] sm:$0xff] %vm869_vm2, %v976_v8  ;;  %v978_v56 = vadd.f32 %v955_v58, %v914_v35  ;;  %v959_v15 = vmul.f32 0.6931472, %v1349_v28 }
 0x319   : > { %v1353_v40 = vpop.eup %1352  ;;  %993 = vst.msk [vmem:[%s1467_s29 + $0x38] sm:$0xff] %vm869_vm2, %v977_v3  ;;  %v979_v60 = vadd.f32 %v957_v51, %v915_v0  ;;  %v961_v61 = vmul.f32 0.6931472, %v1351_v24 }
 0x31a   : > { %v1355_v32 = vpop.eup %1354  ;;  %994 = vst.msk [vmem:[%s1467_s29 + $0x40] sm:$0xff] %vm869_vm2, %v978_v56  ;;  %v980_v12 = vadd.f32 %v959_v15, %v916_v16  ;;  %v963_v26 = vmul.f32 0.6931472, %v1353_v40 }
 0x31b   : > { %v1357_v11 = vpop.eup %1356  ;;  %995 = vst.msk [vmem:[%s1467_s29 + $0x48] sm:$0xff] %vm869_vm2, %v979_v60  ;;  %v981_v7 = vadd.f32 %v961_v61, %v917_v4  ;;  %v965_v18 = vmul.f32 0.6931472, %v1355_v32 }
 0x31c   : > { %v1359_v23 = vpop.eup %1358  ;;  %996 = vst.msk [vmem:[%s1467_s29 + $0x50] sm:$0xff] %vm869_vm2, %v980_v12  ;;  %v982_v5 = vadd.f32 %v963_v26, %v918_v27  ;;  %v967_v13 = vmul.f32 0.6931472, %v1357_v11 }
 0x31d   : > { %997 = vst.msk [vmem:[%s1467_s29 + $0x58] sm:$0xff] %vm869_vm2, %v981_v7  ;;  %v983_v14 = vadd.f32 %v965_v18, %v919_v52  ;;  %v969_v44 = vmul.f32 0.6931472, %v1359_v23 }
 0x31e   : > { %998 = vst.msk [vmem:[%s1467_s29 + $0x60] sm:$0xff] %vm869_vm2, %v982_v5  ;;  %v984_v20 = vadd.f32 %v967_v13, %v920_v30 }
 0x31f   : > { %999 = vst.msk [vmem:[%s1467_s29 + $0x68] sm:$0xff] %vm869_vm2, %v983_v14  ;;  %v985_v36 = vadd.f32 %v969_v44, %v921_v9 }
 0x320   : > { %1000 = vst.msk [vmem:[%s1467_s29 + $0x70] sm:$0xff] %vm869_vm2, %v984_v20 }
 0x321   : > { %1001 = vst.msk [vmem:[%s1467_s29 + $0x78] sm:$0xff] %vm869_vm2, %v985_v36 }
 0x322 PF: > { %s12_s13 = sadd.s32 1, %s1398_s13   ;;  %s1959_s9 = smov %s1390_s11 }
 0x323   : > { %p9_p9 = scmp.ge.s32.totalorder %s12_s13, 6   ;;  %s1960_s10 = smov %s1394_s12 }
 0x324   : > { %s1961_s11 = smov %s1964_s14  ;;  %s1962_s12 = smov %s1968_s15 }
 0x325   :  { %11 = sbr.rel (!%p9_p9) target bundleno = 3 (0x3), region = 69 }

</bundles_post_ra>
